<compile_context>
chip_gen: v7x
topology: tpu7x:2x2x1
jax: 0.10.0
libtpu: 0.0.40
codegen_flags: <defaults>
</compile_context>

<pallas_src>
import jax
import jax.numpy as jnp
from jax.experimental import pallas as pl
from jax.experimental.pallas import tpu as pltpu


def featlayer_kernel(p_ref, w1_ref, b1_ref, w2_ref, b2_ref, o_ref):
    # p_ref : (k*k*Cin, tile)  im2col columns (batch*spatial on lanes)
    # w1_ref: (Ch, k*k*Cin)    first conv weights as a GEMM matrix
    # b1_ref: (Ch, 1)          first conv bias (column, broadcast over lanes)
    # w2_ref: (1, Ch)          1x1 conv weights as a row vector
    # b2_ref: (1,) in SMEM     scalar bias of the 1x1 conv
    # o_ref : (1, tile)        lane-dense output slab
    h = jnp.dot(w1_ref[...], p_ref[...], preferred_element_type=jnp.float32)
    h = jnp.maximum(h + b1_ref[...], 0.0)                       # bias + ReLU
    out = jnp.dot(w2_ref[...], h, preferred_element_type=jnp.float32)
    o_ref[...] = out + b2_ref[0]


def feat_layer_pallas(x_nchw, w1_oihw, b1, w2_oihw11, b2, k):
    """FeatLayer forward.

    x_nchw   : (N, Cin, H, W)   float32
    w1_oihw  : (Ch, Cin, k, k)  float32   (nn.Conv2d weight layout)
    b1       : (Ch,)
    w2_oihw11: (1, Ch, 1, 1)
    b2       : (1,)
    returns  : (N, 1, Ho, Wo), matching Conv2d(k, stride=1, padding=k//2).
    """
    N, Cin, H, W = x_nchw.shape
    Ch = w1_oihw.shape[0]
    pad = k // 2
    Ho = H + 2 * pad - k + 1
    Wo = W + 2 * pad - k + 1
    kkc = k * k * Cin

    # --- wrapper-side layout plumbing (no arithmetic) ------------------------
    x_pad = jnp.pad(x_nchw, ((0, 0), (0, 0), (pad, pad), (pad, pad)))
    views = []
    for ky in range(k):
        for kx in range(k):
            views.append(x_pad[:, :, ky:ky + Ho, kx:kx + Wo])   # (N,Cin,Ho,Wo)
    patches = jnp.stack(views, axis=1)                  # (N, k*k, Cin, Ho, Wo)
    patches = patches.reshape(N, kkc, Ho * Wo)
    p_mat = jnp.moveaxis(patches, 0, 1).reshape(kkc, N * Ho * Wo)

    cols = N * Ho * Wo
    LANE = 128
    tile = min(2048, ((cols + LANE - 1) // LANE) * LANE)   # lane-dense tile
    cols_pad = ((cols + tile - 1) // tile) * tile
    p_mat = jnp.pad(p_mat, ((0, 0), (0, cols_pad - cols)))

    w1_mat = jnp.transpose(w1_oihw, (0, 2, 3, 1)).reshape(Ch, kkc)
    b1_col = b1.reshape(Ch, 1).astype(jnp.float32)
    w2_row = w2_oihw11.reshape(1, Ch).astype(jnp.float32)
    b2_vec = b2.reshape(1).astype(jnp.float32)

    grid = (cols_pad // tile,)
    out = pl.pallas_call(
        featlayer_kernel,
        out_shape=jax.ShapeDtypeStruct((1, cols_pad), jnp.float32),
        grid_spec=pltpu.PrefetchScalarGridSpec(
            num_scalar_prefetch=0,
            grid=grid,
            in_specs=[
                pl.BlockSpec((kkc, tile), lambda i: (0, i)),
                pl.BlockSpec((Ch, kkc), lambda i: (0, 0)),
                pl.BlockSpec((Ch, 1), lambda i: (0, 0)),
                pl.BlockSpec((1, Ch), lambda i: (0, 0)),
                pl.BlockSpec(memory_space=pltpu.MemorySpace.SMEM),
            ],
            out_specs=pl.BlockSpec((1, tile), lambda i: (0, i)),
        ),
        compiler_params=pltpu.CompilerParams(
            dimension_semantics=("parallel",)),
    )(p_mat, w1_mat, b1_col, w2_row, b2_vec)

    out = out[0, :cols].reshape(N, Ho, Wo)
    return out[:, None, :, :]


def ref_forward(x_nchw, w1_oihw, b1, w2_oihw11, b2, k):
    """Pure-JAX reference matching the PyTorch module semantics."""
    pad = k // 2
    y = jax.lax.conv_general_dilated(
        x_nchw, w1_oihw, window_strides=(1, 1),
        padding=[(pad, pad), (pad, pad)],
        dimension_numbers=("NCHW", "OIHW", "NCHW"))
    y = jnp.maximum(y + b1.reshape(1, -1, 1, 1), 0.0)
    z = jax.lax.conv_general_dilated(
        y, w2_oihw11, window_strides=(1, 1), padding=[(0, 0), (0, 0)],
        dimension_numbers=("NCHW", "OIHW", "NCHW"))
    return z + b2.reshape(1, 1, 1, 1)


if __name__ == "__main__":
    # Shapes consistent with FeatLayer(in_channel=4, channel=8, k=3).
    N, Cin, H, W = 2, 4, 16, 16
    Ch, k = 8, 3

    key = jax.random.PRNGKey(0)
    kx, kw1, kb1, kw2, kb2 = jax.random.split(key, 5)

    x = jax.random.normal(kx, (N, Cin, H, W), dtype=jnp.float32)
    # Weights in PyTorch nn.Conv2d layout.
    w1 = jax.random.normal(kw1, (Ch, Cin, k, k), dtype=jnp.float32) * 0.1
    b1 = jax.random.normal(kb1, (Ch,), dtype=jnp.float32) * 0.1
    w2 = jax.random.normal(kw2, (1, Ch, 1, 1), dtype=jnp.float32) * 0.1
    b2 = jax.random.normal(kb2, (1,), dtype=jnp.float32) * 0.1

    out = feat_layer_pallas(x, w1, b1, w2, b2, k)
    out = jax.block_until_ready(out)

    ref = jax.block_until_ready(ref_forward(x, w1, b1, w2, b2, k))
    assert out.shape == (N, 1, H, W), out.shape
    assert jnp.allclose(out, ref, atol=1e-4, rtol=1e-4), "mismatch vs reference"

    print("KERNEL_OK")
</pallas_src>

<mosaic_0001>
module attributes {stable_mosaic.version = 11 : i64} {
  func.func @featlayer_kernel(%arg0: i32, %arg1: memref<36x512xf32, #tpu.memory_space<vmem>>, %arg2: memref<8x36xf32, #tpu.memory_space<vmem>>, %arg3: memref<8x1xf32, #tpu.memory_space<vmem>>, %arg4: memref<1x8xf32, #tpu.memory_space<vmem>>, %arg5: memref<1xf32, #tpu.memory_space<smem>>, %arg6: memref<1x512xf32, #tpu.memory_space<vmem>>) attributes {dimension_semantics = [#tpu.dimension_semantics<parallel>], iteration_bounds = array<i64: 1>, scalar_prefetch = 0 : i64, scratch_operands = 0 : i64, tpu.core_type = #tpu.core_type<tc>, window_params = [{transform_indices = @transform_0, window_bounds = array<i64: 36, 512>}, {pipeline_mode = #tpu.pipeline_mode<synchronous>, transform_indices = @transform_1, window_bounds = array<i64: 8, 36>}, {pipeline_mode = #tpu.pipeline_mode<synchronous>, transform_indices = @transform_2, window_bounds = array<i64: 8, 1>}, {pipeline_mode = #tpu.pipeline_mode<synchronous>, transform_indices = @transform_3, window_bounds = array<i64: 1, 8>}, {transform_indices = @transform_4, window_bounds = array<i64: 1>}, {transform_indices = @transform_5, window_bounds = array<i64: 1, 512>}]} {
    %c0 = arith.constant 0 : index
    %c0_0 = arith.constant 0 : index
    %0 = vector.load %arg2[%c0, %c0_0] : memref<8x36xf32, #tpu.memory_space<vmem>>, vector<8x36xf32>
    %c0_1 = arith.constant 0 : index
    %c0_2 = arith.constant 0 : index
    %1 = vector.load %arg1[%c0_1, %c0_2] : memref<36x512xf32, #tpu.memory_space<vmem>>, vector<36x512xf32>
    %cst = arith.constant dense<0.000000e+00> : vector<8x512xf32>
    %2 = tpu.matmul %0, %1, %cst {dimension_numbers = #tpu.dot_dimension_numbers<[1], [0], [0], [1], [0, 0, 1, 1], [], []>} : vector<8x36xf32>, vector<36x512xf32>, vector<8x512xf32> -> vector<8x512xf32>
    %c0_3 = arith.constant 0 : index
    %c0_4 = arith.constant 0 : index
    %3 = vector.load %arg3[%c0_3, %c0_4] : memref<8x1xf32, #tpu.memory_space<vmem>>, vector<8x1xf32>
    %4 = vector.broadcast %3 : vector<8x1xf32> to vector<8x512xf32>
    %5 = arith.addf %2, %4 : vector<8x512xf32>
    %cst_5 = arith.constant 0.000000e+00 : f32
    %6 = vector.broadcast %cst_5 : f32 to vector<8x512xf32>
    %7 = arith.maximumf %5, %6 : vector<8x512xf32>
    %c0_6 = arith.constant 0 : index
    %c0_7 = arith.constant 0 : index
    %8 = vector.load %arg4[%c0_6, %c0_7] : memref<1x8xf32, #tpu.memory_space<vmem>>, vector<1x8xf32>
    %cst_8 = arith.constant dense<0.000000e+00> : vector<1x512xf32>
    %9 = tpu.matmul %8, %7, %cst_8 {dimension_numbers = #tpu.dot_dimension_numbers<[1], [0], [0], [1], [0, 0, 1, 1], [], []>} : vector<1x8xf32>, vector<8x512xf32>, vector<1x512xf32> -> vector<1x512xf32>
    %c0_9 = arith.constant 0 : index
    %10 = memref.load %arg5[%c0_9] : memref<1xf32, #tpu.memory_space<smem>>
    %11 = vector.broadcast %10 : f32 to vector<1x512xf32>
    %12 = arith.addf %9, %11 : vector<1x512xf32>
    %c0_10 = arith.constant 0 : index
    %c0_11 = arith.constant 0 : index
    %13 = vector.load %arg6[%c0_10, %c0_11] : memref<1x512xf32, #tpu.memory_space<vmem>>, vector<1x512xf32>
    tpu.vector_store %arg6[%c0_10, %c0_11], %12 {strides = array<i32>} : memref<1x512xf32, #tpu.memory_space<vmem>>, vector<1x512xf32>,
    return
  }
  func.func @transform_0(%arg0: i32) -> (i32, i32) {
    %c0_i32 = arith.constant 0 : i32
    %c0_i32_0 = arith.constant 0 : i32
    return %c0_i32, %arg0 : i32, i32
  }
  func.func @transform_1(%arg0: i32) -> (i32, i32) {
    %c0_i32 = arith.constant 0 : i32
    %c0_i32_0 = arith.constant 0 : i32
    %c0_i32_1 = arith.constant 0 : i32
    return %c0_i32, %c0_i32_0 : i32, i32
  }
  func.func @transform_2(%arg0: i32) -> (i32, i32) {
    %c0_i32 = arith.constant 0 : i32
    %c0_i32_0 = arith.constant 0 : i32
    %c0_i32_1 = arith.constant 0 : i32
    return %c0_i32, %c0_i32_0 : i32, i32
  }
  func.func @transform_3(%arg0: i32) -> (i32, i32) {
    %c0_i32 = arith.constant 0 : i32
    %c0_i32_0 = arith.constant 0 : i32
    %c0_i32_1 = arith.constant 0 : i32
    return %c0_i32, %c0_i32_0 : i32, i32
  }
  func.func @transform_4(%arg0: i32) -> i32 {
    %c0_i32 = arith.constant 0 : i32
    %c0_i32_0 = arith.constant 0 : i32
    return %c0_i32 : i32
  }
  func.func @transform_5(%arg0: i32) -> (i32, i32) {
    %c0_i32 = arith.constant 0 : i32
    %c0_i32_0 = arith.constant 0 : i32
    return %c0_i32, %arg0 : i32, i32
  }
}

</mosaic_0001>

<bundles_post_ra>
// kernel: tpu_custom_call.1
= control target key start
LH: loop header
LB: loop body
LE: loop exit
PB: predicated region body
PF: predicated region fallthrough
CT: control target
= control target key end

     0   :  { %11 = vsyncpa [#allocation4], 0  ;;  %s577_s0 = inlined_call_operand.hbm [shape: f32[36,512], index: 0, kind: input, shape index: {}]   ;;  %s578_s1 = inlined_call_operand.vmem [shape: f32[8,36], index: 1, kind: input, shape index: {}]   ;;  %s579_s2 = inlined_call_operand.vmem [shape: f32[8,1], index: 2, kind: input, shape index: {}]   ;;  %s580_s3 = inlined_call_operand.vmem [shape: f32[1,8], index: 3, kind: input, shape index: {}]   ;;  %s581_s4 = inlined_call_operand.<no memory space> [shape: f32[1], index: 4, kind: input, shape index: {}]   ;;  %s582_s5 = inlined_call_operand.hbm [shape: f32[1,512], index: 5, kind: output, shape index: {}]  }
   0x1   :  { %12 = vsyncpa [#allocation5], 0  ;;  %s504_s18 = smov [#allocation3]   ;;  %s456_s22 = scalar_lea.hbm %s577_s0, 2560 }
   0x2   :  { %s18_s19 = sshll.u32 %s504_s18, 4  ;;  %p457_p0 = scmp.ne.s32.totalorder %s577_s0, %s456_s22  ;;  %s19_s19 = int_to_ptr.vmem [resolvable:$true] %s18_s19 }
   0x3   :  { %p460_p1 = scmp.lt.u32.totalorder %s456_s22, %s577_s0 }
   0x5   :  { %p462_p2 = pnand %p460_p1, %p457_p0 }
   0x7   :  { %465 = shalt.err (!%p462_p2)
}
   0x8   :  { %s466_s27 = scalar_lea.vmem %s19_s19, 2560  ;;  %p471_p4 = scmp.lt.s32.totalorder %s19_s19, %s19_s19 }
   0x9   :  { %p467_p3 = scmp.ne.s32.totalorder %s19_s19, %s466_s27  ;;  %p472_p5 = scmp.lt.s32.totalorder %s466_s27, %s466_s27 }
   0xb   :  { %p473_p6 = por %p472_p5, %p471_p4 }
   0xd   :  { %p474_p7 = pnand %p473_p6, %p467_p3 }
   0xf   :  { %477 = shalt.err (!%p474_p7)
}
  0x10   :  { %s505_s28 = smov 512   ;;  %s506_s29 = smov 32  }
  0x11   :  { %24 = dma.hbm_to_vmem [thread:$0]  %s577_s0, 2560, %s19_s19, [#allocation4], %s505_s28, %s505_s28, %s506_s29  }
  0x12   :  { %500 = dma.done.wait [#allocation4], 2560  }
  0x13   :  { %501 = vsyncadd [#allocation4], 4294964736  ;;  %v507_v0 = vmov 0.0   ;;  %v508_v1 = vmov 0   ;;  %v38_v2 = vld [vmem:[#allocation3 + $0x8] sm:$0xff]  ;;  %v40_v4 = vld [vmem:[#allocation3 + $0x18] sm:$0xff]  ;;  %v384_v48 = vlaneseq  ;;  %v228_v49 = vstv %s581_s4 }
  0x14   :  { %144 = vmatprep.mubr.f32.mxu0 %v507_v0  ;;  %215 = vmatprep.mubr.f32.mxu1 %v507_v0  ;;  %v42_v3 = vld [vmem:[#allocation3 + $0x28] sm:$0xff]  ;;  %v44_v6 = vld [vmem:[#allocation3 + $0x38] sm:$0xff]  ;;  %v37_v7 = vld [vmem:[#allocation3] sm:$0xff]  ;;  %vm67_vm0 = vcmask 1043456   ;;  %vm63_vm1 = vcmask 293888   ;;  %vm229_vm2 = vcmask 64512  }
  0x15   :  { %455 = vset.pattern.permute.xlu0 %v508_v1  ;;  %v432_v5 = vpack.c.bf16 %v42_v3, %v38_v2  ;;  %v41_v8 = vld [vmem:[#allocation3 + $0x20] sm:$0xff]  ;;  %v440_v9 = vpack.c.bf16 %v44_v6, %v40_v4  ;;  %v39_v11 = vld [vmem:[#allocation3 + $0x10] sm:$0xff]  ;;  %v46_v13 = vld [vmem:[#allocation3 + $0x48] sm:$0xff]  ;;  %v509_v46 = vmov 1966171168   ;;  %v385_v51 = vshrl.u32 %v384_v48, 7 }
  0x16   :  { %v434_v10 = vpack.c.bf16 %v41_v8, %v37_v7  ;;  %v43_v12 = vld [vmem:[#allocation3 + $0x30] sm:$0xff]  ;;  %v50_v15 = vld [vmem:[#allocation3 + $0x68] sm:$0xff]  ;;  %v48_v16 = vld [vmem:[#allocation3 + $0x58] sm:$0xff]  ;;  %v382_v47 = vunpack.c.l.s4 %v509_v46  ;;  %vm406_vm3 = vcmp.lt.s32.totalorder %v384_v48, 512 }
  0x17   :  { %433 = vmatprep.subr.bf16.mxu0 %v432_v5  ;;  %v442_v14 = vpack.c.bf16 %v43_v12, %v39_v11  ;;  %v52_v17 = vld [vmem:[#allocation3 + $0x78] sm:$0xff]  ;;  %441 = vmatprep.subr.bf16.mxu1 %v440_v9  ;;  %v436_v18 = vpack.c.bf16 %v50_v15, %v46_v13  ;;  %v45_v20 = vld [vmem:[#allocation3 + $0x40] sm:$0xff]  ;;  %v47_v22 = vld [vmem:[#allocation3 + $0x50] sm:$0xff] }
  0x18   :  { %435 = vmatpush1.bf16.msra.mxu0 %v434_v10  ;;  %v444_v19 = vpack.c.bf16 %v52_v17, %v48_v16  ;;  %v49_v21 = vld [vmem:[#allocation3 + $0x60] sm:$0xff]  ;;  %v51_v24 = vld [vmem:[#allocation3 + $0x70] sm:$0xff]  ;;  %v54_v26 = vld [vmem:[#allocation3 + $0x88] sm:$0xf]  ;;  %v383_v50 = vunpack.c.0.s8 %v382_v47 }
  0x19   :  { %443 = vmatpush1.bf16.msra.mxu1 %v442_v14  ;;  %v438_v23 = vpack.c.bf16 %v49_v21, %v45_v20  ;;  %437 = vmatprep.subr.bf16.mxu0 %v436_v18  ;;  %v446_v25 = vpack.c.bf16 %v51_v24, %v47_v22  ;;  %v56_v27 = vld [vmem:[#allocation3 + $0x98] sm:$0xf]  ;;  %v57_v28 = vld [vmem:[%s579_s2] sm:$0xff]  ;;  %v55_v30 = vld [vmem:[#allocation3 + $0x90] sm:$0xf] }
  0x1a   :  { %445 = vmatprep.subr.bf16.mxu1 %v444_v19  ;;  %60 = vperm.xlu0 %455, %v57_v28   ;;  %v53_v29 = vld [vmem:[#allocation3 + $0x80] sm:$0xf]  ;;  %v386_v58 = vsub.s32 %v383_v50, %v385_v51 }
  0x1b   :  { %v36_v31 = vld [vmem:[%s578_s1] sm:$0xff] }
  0x1c   :  { %439 = vmatpush1.bf16.msra.mxu0 %v438_v23  ;;  %v226_v44 = vld [vmem:[%s580_s3] sm:$0x1]  ;;  %s510_s3 = smov [#allocation6]  }
  0x1d   :  { %447 = vmatpush1.bf16.msra.mxu1 %v446_v25  ;;  %424 = vmatprep.subr.msk.mxu0 %vm67_vm0, %v54_v26  ;;  %s415_s12 = sshll.u32 %s510_s3, 4  ;;  %s416_s12 = int_to_ptr.vmem [resolvable:$true] %s415_s12 }
  0x1e   :  { %427 = vmatprep.subr.msk.mxu1 %vm67_vm0, %v56_v27  ;;  %s478_s4 = scalar_lea.vmem %s416_s12, 64  ;;  %p483_p9 = scmp.lt.s32.totalorder %s416_s12, %s416_s12 }
  0x1f   :  { %p479_p8 = scmp.ne.s32.totalorder %s416_s12, %s478_s4  ;;  %p484_p10 = scmp.lt.s32.totalorder %s478_s4, %s478_s4 }
  0x20   :  { %425 = vmatpush1.msk.msra.mxu0 %vm67_vm0, %v53_v29 }
  0x21   :  { %428 = vmatpush1.msk.msra.mxu1 %vm67_vm0, %v55_v30  ;;  %426 = vmatmul.mubr.msk.f32.vlgmr.msra.gmra.mrb[0].mxu0 %vm63_vm1, %v36_v31  ;;  %p485_p11 = por %p484_p10, %p483_p9 }
  0x22   :  { %429 = vmatmul.mubr.msk.f32.vlgmr.msra.gmra.mrb[0].mxu1 %vm63_vm1, %v36_v31  ;;  %297 = vmatprep.mubr.f32.mxu0 %v507_v0 }
  0x23   :  { %368 = vmatprep.mubr.f32.mxu1 %v507_v0  ;;  %p486_p12 = pnand %p485_p11, %p479_p8 }
  0x99   :  { %v61_v32 = vpop.permute.xlu0 %60 }
  0xf4   :  { %v146_v33 = vpop.f32.mrb[0].mxu0 }
  0xf5   :  { %v147_v34 = vadd.f32 %v146_v33, %v61_v32  ;;  %v217_v35 = vpop.f32.mrb[0].mxu1  ;;  %v148_v36 = vpop.f32.mrb[1].mxu0 }
  0xf6   :  { %v218_v37 = vadd.f32 %v217_v35, %v61_v32  ;;  %v149_v38 = vadd.f32 %v148_v36, %v61_v32  ;;  %v219_v39 = vpop.f32.mrb[1].mxu1 }
  0xf7   :  { %v220_v40 = vadd.f32 %v219_v39, %v61_v32  ;;  %v222_v42 = vmax.f32 %v147_v34, 0.0 }
  0xf8   :  { %v223_v41 = vmax.f32 %v149_v38, 0.0  ;;  %v224_v45 = vmax.f32 %v218_v37, 0.0 }
  0xf9   :  { %v225_v43 = vmax.f32 %v220_v40, 0.0 }
  0xfa   :  { %233 = vmatprep.subr.mxu0 %v223_v41 }
  0xfb   :  { %304 = vmatprep.subr.mxu1 %v225_v43  ;;  %234 = vmatpush1.msra.mxu0 %v222_v42 }
  0xfc   :  { %305 = vmatpush1.msra.mxu1 %v224_v45  ;;  %430 = vmatmul.mubr.msk.f32.vlgmr.msra.gmra.mrb[2].mxu0 %vm229_vm2, %v226_v44 }
  0xfd   :  { %431 = vmatmul.mubr.msk.f32.vlgmr.msra.gmra.mrb[2].mxu1 %vm229_vm2, %v226_v44 }
 0x1cf   :  { %v299_v52 = vpop.f32.mrb[2].mxu0 }
 0x1d0   :  { %v300_v53 = vadd.f32 %v299_v52, %v228_v49  ;;  %v370_v54 = vpop.f32.mrb[2].mxu1  ;;  %v301_v55 = vpop.f32.mrb[3].mxu0 }
 0x1d1   :  { %v371_v56 = vadd.f32 %v370_v54, %v228_v49  ;;  %v302_v57 = vadd.f32 %v301_v55, %v228_v49  ;;  %v372_v59 = vpop.f32.mrb[3].mxu1 }
 0x1d2   :  { %v373_v60 = vadd.f32 %v372_v59, %v228_v49 }
 0x1d3   :  { %v379_v61 = vcombine.low %v300_v53, %v302_v57 }
 0x1d4   :  { %v380_v62 = vcombine.low %v371_v56, %v373_v60 }
 0x1d5   :  { %v387_v63 = vrot.slane %v379_v61, %v386_v58 }
 0x1d6   :  { %v394_v0 = vrot.slane %v380_v62, %v386_v58 }
 0x1d8   :  { %v395_v1 = vcombine.low %v387_v63, %v394_v0 }
 0x1da   :  { %v402_v2 = vrot.slane %v395_v1, %v386_v58 }
 0x1dc   :  { %408 = vst.msk [vmem:[#allocation6] sm:$0xf] %vm406_vm3, %v402_v2 }
 0x1dd   :  { %489 = shalt.err (!%p486_p12)
}
 0x1de   :  { %s490_s15 = scalar_lea.hbm %s582_s5, 64 }
 0x1df   :  { %p491_p13 = scmp.ne.s32.totalorder %s582_s5, %s490_s15  ;;  %p494_p0 = scmp.lt.u32.totalorder %s490_s15, %s582_s5 }
 0x1e1   :  { %p496_p1 = pnand %p494_p0, %p491_p13 }
 0x1e3   :  { %499 = shalt.err (!%p496_p1)
}
 0x1e4   :  { %418 = dma.vmem_to_hbm [thread:$0]  %s416_s12, 64, %s582_s5, [#allocation5]  }
 0x1e5   :  { %502 = dma.done.wait [#allocation5], 64  }
 0x1e6   :  { %503 = vsyncadd [#allocation5], 4294967232 }
 0x1e7   :  { %422 = vsyncpa [#allocation4], 1 }
 0x1e8   :  { %423 = vsyncpa [#allocation5], 1 }

</bundles_post_ra>
